<compile_context>
chip_gen: v7x
topology: tpu7x:2x2x1
jax: 0.10.0
libtpu: 0.0.40
codegen_flags: <defaults>
</compile_context>

<pallas_src>
import jax
import jax.numpy as jnp
from jax.experimental import pallas as pl
from jax.experimental.pallas import tpu as pltpu


def _make_layernorm_kernel(eps, affine, n_features):
    inv_n = 1.0 / float(n_features)
    inv_nm1 = 1.0 / float(max(n_features - 1, 1))  # guard degenerate N == 1
    eps_f = float(eps)

    if affine:
        def kernel(x_ref, g_ref, b_ref, o_ref):
            # x_ref: (TB, N) block of flattened samples; g/b: (1, N) resident.
            x = x_ref[...].astype(jnp.float32)
            mean = jnp.sum(x, axis=-1, keepdims=True) * inv_n            # (TB, 1)
            diff = x - mean
            var = jnp.sum(diff * diff, axis=-1, keepdims=True) * inv_nm1  # (TB, 1)
            inv = 1.0 / (jnp.sqrt(var) + eps_f)                           # (TB, 1)
            y = diff * inv
            y = y * g_ref[...].astype(jnp.float32) + b_ref[...].astype(jnp.float32)
            o_ref[...] = y.astype(o_ref.dtype)
        return kernel

    def kernel(x_ref, o_ref):
        x = x_ref[...].astype(jnp.float32)
        mean = jnp.sum(x, axis=-1, keepdims=True) * inv_n
        diff = x - mean
        var = jnp.sum(diff * diff, axis=-1, keepdims=True) * inv_nm1
        inv = 1.0 / (jnp.sqrt(var) + eps_f)
        o_ref[...] = (diff * inv).astype(o_ref.dtype)
    return kernel


def _choose_block_rows(batch, n_features, target_bytes=4 * 1024 * 1024):
    """Pick TB: a multiple of 8 rows such that the f32 tile is ~target_bytes,
    or the full batch when it is small / already fits in one tile."""
    per_row_bytes = n_features * 4  # size tiles conservatively at f32
    rows = max(1, target_bytes // per_row_bytes)
    rows = (rows // 8) * 8
    if rows == 0:
        # Per-sample feature size is enormous; fall back to 8 rows per step.
        # TODO(synk): split the feature axis into an inner grid (two-pass over
        # HBM) for very large C*H*W so a single row block respects v7x VMEM.
        rows = 8
    if rows >= batch:
        return batch  # full array dim is always a legal block dim
    return rows


def layer_norm(x, gamma=None, beta=None, eps=1e-5, affine=True):
    """Per-sample LayerNorm over all non-batch dims, unbiased std, eps on std."""
    orig_shape = x.shape
    B = orig_shape[0]
    C = orig_shape[1]
    N = 1
    for d in orig_shape[1:]:
        N *= d
    spatial = N // C

    x2 = x.reshape(B, N)
    TB = _choose_block_rows(B, N)
    grid = (pl.cdiv(B, TB),)

    kernel = _make_layernorm_kernel(eps, affine, N)

    x_spec = pl.BlockSpec((TB, N), lambda i: (i, 0))
    out_spec = pl.BlockSpec((TB, N), lambda i: (i, 0))

    compiler_params = pltpu.CompilerParams(
        dimension_semantics=("parallel",),      # lets v7x shard the batch grid
        vmem_limit_bytes=32 * 1024 * 1024,      # explicit; ~16 MiB peak in use
    )

    if affine:
        # Pre-broadcast per-channel params to the flattened feature axis once
        # (tiny, outside the hot path); the constant index_map keeps them
        # resident in VMEM across all grid steps.
        g2 = jnp.repeat(gamma.astype(x.dtype), spatial).reshape(1, N)
        b2 = jnp.repeat(beta.astype(x.dtype), spatial).reshape(1, N)
        param_spec = pl.BlockSpec((1, N), lambda i: (0, 0))
        y2 = pl.pallas_call(
            kernel,
            out_shape=jax.ShapeDtypeStruct((B, N), x.dtype),
            grid=grid,
            in_specs=[x_spec, param_spec, param_spec],
            out_specs=out_spec,
            compiler_params=compiler_params,
        )(x2, g2, b2)
    else:
        y2 = pl.pallas_call(
            kernel,
            out_shape=jax.ShapeDtypeStruct((B, N), x.dtype),
            grid=grid,
            in_specs=[x_spec],
            out_specs=out_spec,
            compiler_params=compiler_params,
        )(x2)

    return y2.reshape(orig_shape)


def _reference(x, gamma, beta, eps, affine):
    B = x.shape[0]
    xf = x.astype(jnp.float32).reshape(B, -1)
    mean = xf.mean(axis=1).reshape(B, 1, 1, 1)
    std = jnp.sqrt(xf.var(axis=1, ddof=1)).reshape(B, 1, 1, 1)
    y = (x.astype(jnp.float32) - mean) / (std + eps)
    if affine:
        y = y * gamma.reshape(1, -1, 1, 1) + beta.reshape(1, -1, 1, 1)
    return y.astype(x.dtype)


if __name__ == "__main__":
    key = jax.random.PRNGKey(0)
    kx, kg = jax.random.split(key)

    B, C, H, W = 2, 4, 16, 16
    x = jax.random.normal(kx, (B, C, H, W), dtype=jnp.float32)

    # Deterministic parameter init mirroring nn.Parameter(...).uniform_() / zeros
    gamma = jax.random.uniform(kg, (C,), dtype=jnp.float32)
    beta = jnp.zeros((C,), dtype=jnp.float32)

    out = layer_norm(x, gamma, beta, eps=1e-5, affine=True)
    out = jax.block_until_ready(out)
    ref = _reference(x, gamma, beta, 1e-5, True)
    assert jnp.allclose(out, ref, atol=1e-5, rtol=1e-5), "mismatch vs reference (affine)"

    out_na = layer_norm(x, eps=1e-5, affine=False)
    out_na = jax.block_until_ready(out_na)
    ref_na = _reference(x, None, None, 1e-5, False)
    assert jnp.allclose(out_na, ref_na, atol=1e-5, rtol=1e-5), "mismatch vs reference (no affine)"

    print("KERNEL_OK")
</pallas_src>

<mosaic_0001>
module attributes {stable_mosaic.version = 11 : i64} {
  func.func @kernel(%arg0: i32, %arg1: memref<2x1024xf32, #tpu.memory_space<vmem>>, %arg2: memref<1x1024xf32, #tpu.memory_space<vmem>>, %arg3: memref<1x1024xf32, #tpu.memory_space<vmem>>, %arg4: memref<2x1024xf32, #tpu.memory_space<vmem>>) attributes {dimension_semantics = [#tpu.dimension_semantics<parallel>], iteration_bounds = array<i64: 1>, scalar_prefetch = 0 : i64, scratch_operands = 0 : i64, tpu.core_type = #tpu.core_type<tc>, window_params = [{transform_indices = @transform_0, window_bounds = array<i64: 2, 1024>}, {pipeline_mode = #tpu.pipeline_mode<synchronous>, transform_indices = @transform_1, window_bounds = array<i64: 1, 1024>}, {pipeline_mode = #tpu.pipeline_mode<synchronous>, transform_indices = @transform_2, window_bounds = array<i64: 1, 1024>}, {transform_indices = @transform_3, window_bounds = array<i64: 2, 1024>}]} {
    %c0 = arith.constant 0 : index
    %c0_0 = arith.constant 0 : index
    %0 = vector.load %arg1[%c0, %c0_0] : memref<2x1024xf32, #tpu.memory_space<vmem>>, vector<2x1024xf32>
    %cst = arith.constant dense<0.000000e+00> : vector<2xf32>
    %1 = vector.multi_reduction <add>, %0, %cst [1] : vector<2x1024xf32> to vector<2xf32>
    %2 = vector.shape_cast %1 : vector<2xf32> to vector<2x1xf32>
    %cst_1 = arith.constant 9.765625E-4 : f32
    %3 = vector.broadcast %cst_1 : f32 to vector<2x1xf32>
    %4 = arith.mulf %2, %3 : vector<2x1xf32>
    %5 = vector.broadcast %4 : vector<2x1xf32> to vector<2x1024xf32>
    %6 = arith.subf %0, %5 : vector<2x1024xf32>
    %7 = arith.mulf %6, %6 : vector<2x1024xf32>
    %cst_2 = arith.constant dense<0.000000e+00> : vector<2xf32>
    %8 = vector.multi_reduction <add>, %7, %cst_2 [1] : vector<2x1024xf32> to vector<2xf32>
    %9 = vector.shape_cast %8 : vector<2xf32> to vector<2x1xf32>
    %cst_3 = arith.constant 9.77517105E-4 : f32
    %10 = vector.broadcast %cst_3 : f32 to vector<2x1xf32>
    %11 = arith.mulf %9, %10 : vector<2x1xf32>
    %12 = math.sqrt %11 : vector<2x1xf32>
    %cst_4 = arith.constant 9.99999974E-6 : f32
    %13 = vector.broadcast %cst_4 : f32 to vector<2x1xf32>
    %14 = arith.addf %12, %13 : vector<2x1xf32>
    %cst_5 = arith.constant 1.000000e+00 : f32
    %15 = vector.broadcast %cst_5 : f32 to vector<2x1xf32>
    %16 = arith.divf %15, %14 : vector<2x1xf32>
    %17 = vector.broadcast %16 : vector<2x1xf32> to vector<2x1024xf32>
    %18 = arith.mulf %6, %17 : vector<2x1024xf32>
    %c0_6 = arith.constant 0 : index
    %c0_7 = arith.constant 0 : index
    %19 = vector.load %arg2[%c0_6, %c0_7] : memref<1x1024xf32, #tpu.memory_space<vmem>>, vector<1x1024xf32>
    %20 = vector.broadcast %19 : vector<1x1024xf32> to vector<2x1024xf32>
    %21 = arith.mulf %18, %20 : vector<2x1024xf32>
    %c0_8 = arith.constant 0 : index
    %c0_9 = arith.constant 0 : index
    %22 = vector.load %arg3[%c0_8, %c0_9] : memref<1x1024xf32, #tpu.memory_space<vmem>>, vector<1x1024xf32>
    %23 = vector.broadcast %22 : vector<1x1024xf32> to vector<2x1024xf32>
    %24 = arith.addf %21, %23 : vector<2x1024xf32>
    %c0_10 = arith.constant 0 : index
    %c0_11 = arith.constant 0 : index
    %25 = vector.load %arg4[%c0_10, %c0_11] : memref<2x1024xf32, #tpu.memory_space<vmem>>, vector<2x1024xf32>
    tpu.vector_store %arg4[%c0_10, %c0_11], %24 {strides = array<i32>} : memref<2x1024xf32, #tpu.memory_space<vmem>>, vector<2x1024xf32>,
    return
  }
  func.func @transform_0(%arg0: i32) -> (i32, i32) {
    %c0_i32 = arith.constant 0 : i32
    %c0_i32_0 = arith.constant 0 : i32
    return %arg0, %c0_i32 : i32, i32
  }
  func.func @transform_1(%arg0: i32) -> (i32, i32) {
    %c0_i32 = arith.constant 0 : i32
    %c0_i32_0 = arith.constant 0 : i32
    %c0_i32_1 = arith.constant 0 : i32
    return %c0_i32, %c0_i32_0 : i32, i32
  }
  func.func @transform_2(%arg0: i32) -> (i32, i32) {
    %c0_i32 = arith.constant 0 : i32
    %c0_i32_0 = arith.constant 0 : i32
    %c0_i32_1 = arith.constant 0 : i32
    return %c0_i32, %c0_i32_0 : i32, i32
  }
  func.func @transform_3(%arg0: i32) -> (i32, i32) {
    %c0_i32 = arith.constant 0 : i32
    %c0_i32_0 = arith.constant 0 : i32
    return %arg0, %c0_i32 : i32, i32
  }
}

</mosaic_0001>

<bundles_post_ra>
// kernel: tpu_custom_call.1
= control target key start
LH: loop header
LB: loop body
LE: loop exit
PB: predicated region body
PF: predicated region fallthrough
CT: control target
= control target key end

     0   :  { %8 = vsyncpa [#allocation3], 0  ;;  %s613_s0 = inlined_call_operand.hbm [shape: f32[2,1024], index: 0, kind: input, shape index: {}]   ;;  %s614_s1 = inlined_call_operand.hbm [shape: f32[1,1024], index: 1, kind: input, shape index: {}]   ;;  %s615_s2 = inlined_call_operand.hbm [shape: f32[1,1024], index: 2, kind: input, shape index: {}]   ;;  %s616_s3 = inlined_call_operand.hbm [shape: f32[2,1024], index: 3, kind: output, shape index: {}]  }
   0x1   :  { %9 = vsyncpa [#allocation6], 0 }
   0x2   :  { %10 = vsyncpa [#allocation4], 0  ;;  %s479_s12 = smov [#allocation5]   ;;  %s480_s14 = smov [#allocation2]  }
   0x3   :  { %s27_s13 = sshll.u32 %s479_s12, 4  ;;  %s17_s15 = sshll.u32 %s480_s14, 4  ;;  %s28_s13 = int_to_ptr.vmem [resolvable:$true] %s27_s13  ;;  %s18_s15 = int_to_ptr.vmem [resolvable:$true] %s17_s15 }
   0x4   :  { %s385_s18 = scalar_lea.hbm %s614_s1, 128 }
   0x5   :  { %p386_p0 = scmp.ne.s32.totalorder %s614_s1, %s385_s18  ;;  %p389_p1 = scmp.lt.u32.totalorder %s385_s18, %s614_s1 }
   0x7   :  { %p391_p2 = pnand %p389_p1, %p386_p0 }
   0x9   :  { %394 = shalt.err (!%p391_p2)
}
   0xa   :  { %s395_s23 = scalar_lea.vmem %s28_s13, 128  ;;  %p400_p4 = scmp.lt.s32.totalorder %s28_s13, %s28_s13 }
   0xb   :  { %p396_p3 = scmp.ne.s32.totalorder %s28_s13, %s395_s23  ;;  %p401_p5 = scmp.lt.s32.totalorder %s395_s23, %s395_s23 }
   0xd   :  { %p402_p6 = por %p401_p5, %p400_p4 }
   0xf   :  { %p403_p7 = pnand %p402_p6, %p396_p3 }
  0x11   :  { %406 = shalt.err (!%p403_p7)
}
  0x12   :  { %30 = dma.hbm_to_vmem [thread:$0]  %s614_s1, 128, %s28_s13, [#allocation6]  }
  0x13   :  { %s407_s28 = scalar_lea.hbm %s613_s0, 256 }
  0x14   :  { %p408_p8 = scmp.ne.s32.totalorder %s613_s0, %s407_s28  ;;  %p411_p9 = scmp.lt.u32.totalorder %s407_s28, %s613_s0 }
  0x16   :  { %p413_p10 = pnand %p411_p9, %p408_p8 }
  0x18   :  { %416 = shalt.err (!%p413_p10)
}
  0x19   :  { %s417_s6 = scalar_lea.vmem %s18_s15, 256  ;;  %p422_p12 = scmp.lt.s32.totalorder %s18_s15, %s18_s15 }
  0x1a   :  { %p418_p11 = scmp.ne.s32.totalorder %s18_s15, %s417_s6  ;;  %p423_p13 = scmp.lt.s32.totalorder %s417_s6, %s417_s6 }
  0x1c   :  { %p424_p0 = por %p423_p13, %p422_p12 }
  0x1e   :  { %p425_p1 = pnand %p424_p0, %p418_p11 }
  0x20   :  { %428 = shalt.err (!%p425_p1)
}
  0x21   :  { %20 = dma.hbm_to_vmem [thread:$0]  %s613_s0, 256, %s18_s15, [#allocation3]  }
  0x22   :  { %s481_s8 = smov [#allocation7]   ;;  %s429_s12 = scalar_lea.hbm %s615_s2, 128 }
  0x23   :  { %s37_s9 = sshll.u32 %s481_s8, 4  ;;  %p430_p2 = scmp.ne.s32.totalorder %s615_s2, %s429_s12  ;;  %s38_s9 = int_to_ptr.vmem [resolvable:$true] %s37_s9 }
  0x24   :  { %p433_p3 = scmp.lt.u32.totalorder %s429_s12, %s615_s2 }
  0x26   :  { %p435_p4 = pnand %p433_p3, %p430_p2 }
  0x28   :  { %438 = shalt.err (!%p435_p4)
}
  0x29   :  { %s439_s18 = scalar_lea.vmem %s38_s9, 128  ;;  %p444_p6 = scmp.lt.s32.totalorder %s38_s9, %s38_s9 }
  0x2a   :  { %p440_p5 = scmp.ne.s32.totalorder %s38_s9, %s439_s18  ;;  %p445_p7 = scmp.lt.s32.totalorder %s439_s18, %s439_s18 }
  0x2c   :  { %p446_p8 = por %p445_p7, %p444_p6 }
  0x2e   :  { %p447_p9 = pnand %p446_p8, %p440_p5 }
  0x30   :  { %450 = shalt.err (!%p447_p9)
}
  0x31   :  { %40 = dma.hbm_to_vmem [thread:$0]  %s615_s2, 128, %s38_s9, [#allocation6]  }
  0x32   :  { %473 = dma.done.wait [#allocation3], 256  }
  0x33   :  { %474 = vsyncadd [#allocation3], 4294967040 }
  0x34   :  { %475 = dma.done.wait [#allocation6], 256  }
  0x35   :  { %476 = vsyncadd [#allocation6], 4294967040  ;;  %v58_v0 = vlaneseq  ;;  %v482_v1 = vmov 1983009808   ;;  %v50_v6 = vld [vmem:[#allocation2] sm:$0xff]  ;;  %v51_v7 = vld [vmem:[#allocation2 + $0x8] sm:$0xff] }
  0x36   :  { %v56_v2 = vunpack.c.l.s4 %v482_v1  ;;  %v54_v8 = vcombine.high %v50_v6, %v50_v6  ;;  %vm96_vm0 = vcmask 1041408   ;;  %v71_v12 = vcombine.high %v51_v7, %v51_v7  ;;  %s484_s2 = smov [#allocation8]  }
  0x37   :  { %v541_v3 = vshrl.u32 %v58_v0, 7  ;;  %v483_v33 = vmov 269488144   ;;  %s363_s19 = sshll.u32 %s484_s2, 4  ;;  %s364_s19 = int_to_ptr.vmem [resolvable:$true] %s363_s19 }
  0x38   :  { %v57_v4 = vunpack.c.0.s8 %v56_v2  ;;  %v117_v34 = vunpack.c.l.s4 %v483_v33  ;;  %s451_s20 = scalar_lea.vmem %s364_s19, 256  ;;  %p456_p11 = scmp.lt.s32.totalorder %s364_s19, %s364_s19 }
  0x39   :  { %p452_p10 = scmp.ne.s32.totalorder %s364_s19, %s451_s20  ;;  %p457_p12 = scmp.lt.s32.totalorder %s451_s20, %s451_s20 }
  0x3a   :  { %v544_v5 = vsub.s32 %v57_v4, %v541_v3  ;;  %v118_v35 = vunpack.c.0.s8 %v117_v34 }
  0x3b   :  { %p458_p13 = por %p457_p12, %p456_p11 }
  0x3c   :  { %v61_v9 = vrot.slane %v50_v6, %v544_v5  ;;  %v68_v10 = vrot.slane %v54_v8, %v544_v5  ;;  %v78_v13 = vrot.slane %v51_v7, %v544_v5  ;;  %v85_v19 = vrot.slane %v71_v12, %v544_v5 }
  0x3d   :  { %v559_v36 = vsub.s32 %v118_v35, %v541_v3  ;;  %v223_v12 = vsub.s32 2, %v541_v3  ;;  %p459_p0 = pnand %p458_p13, %p452_p10 }
  0x3e   :  { %v69_v11 = vcombine.high %v61_v9, %v61_v9  ;;  %v97_v14 = vsel %vm96_vm0, %v61_v9, 0.0  ;;  %v70_v15 = vcombine.high %v68_v10, %v68_v10  ;;  %v100_v17 = vsel %vm96_vm0, %v68_v10, 0.0 }
  0x3f   :  { %v86_v20 = vcombine.high %v78_v13, %v78_v13  ;;  %v104_v23 = vsel %vm96_vm0, %v78_v13, 0.0  ;;  %v87_v25 = vcombine.high %v85_v19, %v85_v19  ;;  %v108_v28 = vsel %vm96_vm0, %v85_v19, 0.0 }
  0x40   :  { %v98_v16 = vsel %vm96_vm0, %v69_v11, 0.0  ;;  %v102_v21 = vsel %vm96_vm0, %v70_v15, 0.0  ;;  %v215_v10 = vsub.s32 0, %v541_v3  ;;  %v219_v11 = vsub.s32 1, %v541_v3 }
  0x41   :  { %v99_v18 = vadd.f32 %v98_v16, %v97_v14  ;;  %v106_v26 = vsel %vm96_vm0, %v86_v20, 0.0  ;;  %v110_v30 = vsel %vm96_vm0, %v87_v25, 0.0  ;;  %v211_v14 = vld [vmem:[#allocation5] sm:$0xff]  ;;  %v227_v15 = vsub.s32 3, %v541_v3 }
  0x42   :  { %v231_v16 = vsub.s32 4, %v541_v3  ;;  %v239_v19 = vsub.s32 6, %v541_v3  ;;  %v243_v20 = vsub.s32 7, %v541_v3  ;;  %v220_v25 = vrot.slane %v211_v14, %v219_v11 }
  0x43   :  { %v101_v22 = vadd.f32 %v100_v17, %v99_v18  ;;  %v235_v17 = vsub.s32 5, %v541_v3 }
  0x45   :  { %v103_v24 = vadd.f32 %v102_v21, %v101_v22  ;;  %v283_v22 = vld [vmem:[#allocation7] sm:$0xff] }
  0x46   :  { %v288_v33 = vrot.slane %v283_v22, %v215_v10  ;;  %v292_v34 = vrot.slane %v283_v22, %v219_v11  ;;  %v296_v35 = vrot.slane %v283_v22, %v223_v12  ;;  %v308_v3 = vrot.slane %v283_v22, %v235_v17 }
  0x47   :  { %v105_v27 = vadd.f32 %v104_v23, %v103_v24  ;;  %v216_v24 = vrot.slane %v211_v14, %v215_v10 }
  0x49   :  { %v107_v29 = vadd.f32 %v106_v26, %v105_v27  ;;  %v224_v27 = vrot.slane %v211_v14, %v223_v12 }
  0x4b   :  { %v109_v31 = vadd.f32 %v108_v28, %v107_v29  ;;  %v228_v28 = vrot.slane %v211_v14, %v227_v15  ;;  %v232_v29 = vrot.slane %v211_v14, %v231_v16 }
  0x4d   :  { %v111_v32 = vadd.f32 %v110_v30, %v109_v31  ;;  %v236_v30 = vrot.slane %v211_v14, %v235_v17  ;;  %v240_v31 = vrot.slane %v211_v14, %v239_v19 }
  0x4f   :  { %112 = vadd.xlane.f32.xlu0 %v111_v32  ;;  %v244_v32 = vrot.slane %v211_v14, %v243_v20 }
  0xdc   :  { %v113_v37 = vpop.xlane.xlu0 %112 }
  0xdd   :  { %v114_v38 = vmul.f32 0.0009765625, %v113_v37  ;;  %v300_v37 = vrot.slane %v283_v22, %v227_v15 }
  0xdf   :  { %v122_v39 = vrot.slane %v114_v38, %v559_v36  ;;  %v304_v38 = vrot.slane %v283_v22, %v231_v16 }
  0xe1   :  { %v562_v40 = vsub.f32 %v50_v6, %v122_v39  ;;  %v564_v41 = vsub.f32 %v51_v7, %v122_v39  ;;  %v312_v39 = vrot.slane %v283_v22, %v239_v19 }
  0xe3   :  { %v126_v42 = vmul.f32 %v562_v40, %v562_v40  ;;  %v127_v43 = vmul.f32 %v564_v41, %v564_v41 }
  0xe5   :  { %v130_v44 = vcombine.high %v126_v42, %v126_v42  ;;  %v137_v45 = vrot.slane %v126_v42, %v544_v5  ;;  %v154_v48 = vrot.slane %v127_v43, %v544_v5  ;;  %v147_v52 = vcombine.high %v127_v43, %v127_v43 }
  0xe6   :  { %v316_v42 = vrot.slane %v283_v22, %v243_v20  ;;  %v245_v43 = vcombine.low %v216_v24, %v220_v25 }
  0xe7   :  { %v144_v46 = vrot.slane %v130_v44, %v544_v5  ;;  %v145_v47 = vcombine.high %v137_v45, %v137_v45  ;;  %v172_v49 = vsel %vm96_vm0, %v137_v45, 0.0  ;;  %v161_v56 = vrot.slane %v147_v52, %v544_v5 }
  0xe8   :  { %v162_v57 = vcombine.high %v154_v48, %v154_v48  ;;  %v179_v60 = vsel %vm96_vm0, %v154_v48, 0.0  ;;  %v246_v44 = vcombine.low %v224_v27, %v228_v28  ;;  %v262_v45 = vcombine.low %v232_v29, %v236_v30 }
  0xe9   :  { %v173_v50 = vsel %vm96_vm0, %v145_v47, 0.0  ;;  %v146_v51 = vcombine.high %v144_v46, %v144_v46  ;;  %v175_v54 = vsel %vm96_vm0, %v144_v46, 0.0  ;;  %v163_v62 = vcombine.high %v161_v56, %v161_v56 }
  0xea   :  { %v174_v53 = vadd.f32 %v173_v50, %v172_v49  ;;  %v181_v63 = vsel %vm96_vm0, %v162_v57, 0.0  ;;  %v183_v1 = vsel %vm96_vm0, %v161_v56, 0.0  ;;  %v263_v46 = vcombine.low %v240_v31, %v244_v32 }
  0xeb   :  { %v177_v58 = vsel %vm96_vm0, %v146_v51, 0.0  ;;  %v185_v4 = vsel %vm96_vm0, %v163_v62, 0.0  ;;  %v317_v47 = vcombine.low %v288_v33, %v292_v34  ;;  %v318_v48 = vcombine.low %v296_v35, %v300_v37 }
  0xec   :  { %v176_v55 = vadd.f32 %v175_v54, %v174_v53  ;;  %v334_v49 = vcombine.low %v304_v38, %v308_v3  ;;  %v335_v50 = vcombine.low %v312_v39, %v316_v42  ;;  %v253_v51 = vrot.slane %v245_v43, %v544_v5 }
  0xed   :  { %v260_v52 = vrot.slane %v246_v44, %v544_v5  ;;  %v270_v53 = vrot.slane %v262_v45, %v544_v5  ;;  %v277_v54 = vrot.slane %v263_v46, %v544_v5  ;;  %v332_v56 = vrot.slane %v318_v48, %v544_v5 }
  0xee   :  { %v178_v59 = vadd.f32 %v177_v58, %v176_v55  ;;  %v325_v55 = vrot.slane %v317_v47, %v544_v5  ;;  %v342_v57 = vrot.slane %v334_v49, %v544_v5  ;;  %v349_v58 = vrot.slane %v335_v50, %v544_v5 }
  0xef   :  { %v278_v62 = vcombine.low %v270_v53, %v277_v54 }
  0xf0   :  { %v180_v61 = vadd.f32 %v179_v60, %v178_v59 }
  0xf2   :  { %v182_v0 = vadd.f32 %v181_v63, %v180_v61  ;;  %v261_v61 = vcombine.low %v253_v51, %v260_v52 }
  0xf4   :  { %v184_v2 = vadd.f32 %v183_v1, %v182_v0  ;;  %v333_v1 = vcombine.low %v325_v55, %v332_v56 }
  0xf6   :  { %v186_v6 = vadd.f32 %v185_v4, %v184_v2  ;;  %v350_v2 = vcombine.low %v342_v57, %v349_v58 }
  0xf8   :  { %187 = vadd.xlane.f32.xlu0 %v186_v6 }
 0x185   :  { %v188_v7 = vpop.xlane.xlu0 %187 }
 0x186   :  { %v189_v8 = vmul.f32 0.0009775171, %v188_v7 }
 0x188   :  { %381 = vrsqrt.f32 %v189_v8  ;;  %vm192_vm1 = vcmp.eq.f32.partialorder %v189_v8, inf  ;;  %v195_v18 = vand.u32 2147483648, %v189_v8  ;;  %vm194_vm2 = vcmp.eq.f32.partialorder %v189_v8, 0.0 }
 0x192   :  { %v382_v9 = vpop.eup %381 }
 0x193   :  { %v191_v13 = vmul.f32 %v382_v9, %v189_v8 }
 0x195   :  { %v193_v21 = vsel %vm192_vm1, %v189_v8, %v191_v13 }
 0x196   :  { %v196_v23 = vsel %vm194_vm2, %v195_v18, %v193_v21 }
 0x197   :  { %v197_v26 = vadd.f32 1e-05, %v196_v23 }
 0x199   :  { %383 = vrcp.f32 %v197_v26 }
 0x1a3   :  { %v384_v59 = vpop.eup %383 }
 0x1a4   :  { %v207_v60 = vrot.slane %v384_v59, %v559_v36 }
 0x1a6   :  { %v209_v63 = vmul.f32 %v207_v60, %v562_v40  ;;  %v210_v0 = vmul.f32 %v207_v60, %v564_v41 }
 0x1a8   :  { %v281_v4 = vmul.f32 %v261_v61, %v209_v63  ;;  %v282_v6 = vmul.f32 %v278_v62, %v210_v0 }
 0x1aa   :  { %v353_v7 = vadd.f32 %v333_v1, %v281_v4  ;;  %v354_v8 = vadd.f32 %v350_v2, %v282_v6 }
 0x1ac   :  { %355 = vst [vmem:[#allocation8] sm:$0xff] %v353_v7  ;;  %356 = vst [vmem:[#allocation8 + $0x8] sm:$0xff] %v354_v8 }
 0x1ad   :  { %462 = shalt.err (!%p459_p0)
}
 0x1ae   :  { %s463_s23 = scalar_lea.hbm %s616_s3, 256 }
 0x1af   :  { %p464_p1 = scmp.ne.s32.totalorder %s616_s3, %s463_s23  ;;  %p467_p2 = scmp.lt.u32.totalorder %s463_s23, %s616_s3 }
 0x1b1   :  { %p469_p3 = pnand %p467_p2, %p464_p1 }
 0x1b3   :  { %472 = shalt.err (!%p469_p3)
}
 0x1b4   :  { %366 = dma.vmem_to_hbm [thread:$0]  %s364_s19, 256, %s616_s3, [#allocation4]  }
 0x1b5   :  { %477 = dma.done.wait [#allocation4], 256  }
 0x1b6   :  { %478 = vsyncadd [#allocation4], 4294967040 }
 0x1b7   :  { %370 = vsyncpa [#allocation3], 1 }
 0x1b8   :  { %371 = vsyncpa [#allocation6], 1 }
 0x1b9   :  { %372 = vsyncpa [#allocation4], 1 }

</bundles_post_ra>
